<compile_context>
chip_gen: v7x
topology: tpu7x:2x2x1
jax: 0.10.0
libtpu: 0.0.40
codegen_flags: <defaults>
</compile_context>

<pallas_src>
import functools

import jax
import jax.numpy as jnp
from jax.experimental import pallas as pl
from jax.experimental.pallas import tpu as pltpu


def _channel_norm_kernel(x_ref, o_ref, *, eps, num_channels):
    # x_ref / o_ref: (Nb, C, TS) — channels on sublanes, spatial tile on lanes.
    x = x_ref[...].astype(jnp.float32)
    mu = jnp.mean(x, axis=1, keepdims=True)
    diff = x - mu
    # torch.Tensor.std defaults to the unbiased estimator (ddof = 1).
    # (Guarded with max(...) so C == 1 does not divide by zero; torch would give NaN there.)
    inv_ddof = 1.0 / max(num_channels - 1, 1)
    var = jnp.sum(diff * diff, axis=1, keepdims=True) * inv_ddof
    # sqrt/reciprocal run on the EUP (separate VLIW slot); divide -> multiply.
    inv_sigma = pl.reciprocal(jnp.sqrt(var) + eps, approx=False)
    o_ref[...] = (diff * inv_sigma).astype(o_ref.dtype)


def _vmem_limit_bytes():
    """Generation-aware scoped-VMEM limit with ~25% headroom (v7x only has 64 MiB)."""
    try:
        cap = int(pltpu.get_tpu_info().vmem_capacity_bytes)
    except Exception:
        cap = 64 * 1024 * 1024  # conservative fallback (safe on v5e/v6e/v7x)
    return min((cap * 3) // 4, 96 * 1024 * 1024)


def _pick_tiles(N, C, S, itemsize, pipeline_budget_bytes):
    """Pick (Nb, tile_s): batch-block count and lane-dense spatial tile size.

    VMEM cost per block element:
      * double-buffered (in + out) HBM tiles:            4 * itemsize bytes
      * ~2 f32 tile-sized intermediates in the kernel:    8 bytes
    """
    bytes_per_elem = 4 * itemsize + 8
    max_elems = max(pipeline_budget_bytes // bytes_per_elem, C * 128)

    # Spatial tile: biggest multiple-of-128 tile within budget.
    if S < 128:
        tile_s = S  # full-extent last dim is always legal
    else:
        max_tile_s = max(((max_elems // C) // 128) * 128, 128)
        tile_s = min((S // 128) * 128, max_tile_s)
    s_blocks = -(-S // tile_s)  # cdiv; ragged tail is masked on store

    # Batch blocking: biggest divisor of N whose block still fits the budget.
    nb_cap = max(max_elems // (C * tile_s), 1)
    nb = 1
    for d in range(1, N + 1):
        if N % d == 0 and d <= nb_cap:
            nb = d

    # Megacore: keep >= 2 parallel grid steps when the problem allows it.
    if (N // nb) * s_blocks < 2:
        if N >= 2:
            nb = max(d for d in range(1, N) if N % d == 0)  # -> N // nb >= 2
        elif tile_s >= 256:
            tile_s = ((tile_s // 2) // 128) * 128

    return nb, tile_s


def channel_norm_forward(x, *, eps=1e-6):
    """ChannelNorm forward. x: (N, C, H, W). Returns (x - mean_c) / (std_c + eps)."""
    N, C, H, W = x.shape
    S = H * W
    # Contiguous reshape (free): spatial goes on the lane axis.
    x3 = x.reshape(N, C, S)

    vmem_limit = _vmem_limit_bytes()
    pipeline_budget = min(max(vmem_limit // 2, 8 * 1024 * 1024), 32 * 1024 * 1024)
    nb, tile_s = _pick_tiles(N, C, S, jnp.dtype(x.dtype).itemsize, pipeline_budget)

    grid = (N // nb, -(-S // tile_s))
    kernel = functools.partial(_channel_norm_kernel, eps=eps, num_channels=C)

    y3 = pl.pallas_call(
        kernel,
        out_shape=jax.ShapeDtypeStruct((N, C, S), x.dtype),
        grid_spec=pltpu.PrefetchScalarGridSpec(
            num_scalar_prefetch=0,
            grid=grid,
            in_specs=[pl.BlockSpec((nb, C, tile_s), lambda n, s: (n, 0, s))],
            out_specs=pl.BlockSpec((nb, C, tile_s), lambda n, s: (n, 0, s)),
        ),
        compiler_params=pltpu.CompilerParams(
            dimension_semantics=("parallel", "parallel"),
            vmem_limit_bytes=vmem_limit,
        ),
    )(x3)

    return y3.reshape(N, C, H, W)


def channel_norm_reference(x, eps=1e-6):
    """Pure-JAX reference matching torch semantics (unbiased std, ddof=1)."""
    mu = jnp.mean(x, axis=1, keepdims=True)
    sigma = jnp.std(x, axis=1, keepdims=True, ddof=1) + eps
    return (x - mu) / sigma


if __name__ == "__main__":
    key = jax.random.PRNGKey(0)
    N, C, H, W = 2, 4, 16, 16
    x = jax.random.normal(key, (N, C, H, W), dtype=jnp.float32)

    out = jax.block_until_ready(channel_norm_forward(x))
    ref = channel_norm_reference(x)

    assert out.shape == (N, C, H, W), out.shape
    assert jnp.allclose(out, ref, atol=1e-5, rtol=1e-5), float(jnp.max(jnp.abs(out - ref)))

    print("KERNEL_OK")
</pallas_src>

<mosaic_0001>
module attributes {stable_mosaic.version = 11 : i64} {
  func.func @_channel_norm_kernel(%arg0: i32, %arg1: i32, %arg2: memref<1x4x256xf32, #tpu.memory_space<vmem>>, %arg3: memref<1x4x256xf32, #tpu.memory_space<vmem>>) attributes {dimension_semantics = [#tpu.dimension_semantics<parallel>, #tpu.dimension_semantics<parallel>], iteration_bounds = array<i64: 2, 1>, scalar_prefetch = 0 : i64, scratch_operands = 0 : i64, tpu.core_type = #tpu.core_type<tc>, window_params = [{transform_indices = @transform_0, window_bounds = array<i64: 1, 4, 256>}, {transform_indices = @transform_1, window_bounds = array<i64: 1, 4, 256>}]} {
    %c0 = arith.constant 0 : index
    %c0_0 = arith.constant 0 : index
    %c0_1 = arith.constant 0 : index
    %0 = vector.load %arg2[%c0, %c0_0, %c0_1] : memref<1x4x256xf32, #tpu.memory_space<vmem>>, vector<1x4x256xf32>
    %cst = arith.constant dense<0.000000e+00> : vector<1x256xf32>
    %1 = vector.multi_reduction <add>, %0, %cst [1] : vector<1x4x256xf32> to vector<1x256xf32>
    %2 = vector.shape_cast %1 : vector<1x256xf32> to vector<1x1x256xf32>
    %cst_2 = arith.constant 4.000000e+00 : f32
    %3 = vector.broadcast %cst_2 : f32 to vector<1x1x256xf32>
    %4 = arith.divf %2, %3 : vector<1x1x256xf32>
    %5 = vector.broadcast %4 : vector<1x1x256xf32> to vector<1x4x256xf32>
    %6 = arith.subf %0, %5 : vector<1x4x256xf32>
    %7 = arith.mulf %6, %6 : vector<1x4x256xf32>
    %cst_3 = arith.constant dense<0.000000e+00> : vector<1x256xf32>
    %8 = vector.multi_reduction <add>, %7, %cst_3 [1] : vector<1x4x256xf32> to vector<1x256xf32>
    %9 = vector.shape_cast %8 : vector<1x256xf32> to vector<1x1x256xf32>
    %cst_4 = arith.constant 0.333333343 : f32
    %10 = vector.broadcast %cst_4 : f32 to vector<1x1x256xf32>
    %11 = arith.mulf %9, %10 : vector<1x1x256xf32>
    %12 = math.sqrt %11 : vector<1x1x256xf32>
    %cst_5 = arith.constant 9.99999997E-7 : f32
    %13 = vector.broadcast %cst_5 : f32 to vector<1x1x256xf32>
    %14 = arith.addf %12, %13 : vector<1x1x256xf32>
    %15 = tpu.reciprocal %14 : vector<1x1x256xf32> -> vector<1x1x256xf32>
    %16 = vector.broadcast %15 : vector<1x1x256xf32> to vector<1x4x256xf32>
    %17 = arith.mulf %6, %16 : vector<1x4x256xf32>
    %c0_6 = arith.constant 0 : index
    %c0_7 = arith.constant 0 : index
    %c0_8 = arith.constant 0 : index
    %18 = vector.load %arg3[%c0_6, %c0_7, %c0_8] : memref<1x4x256xf32, #tpu.memory_space<vmem>>, vector<1x4x256xf32>
    tpu.vector_store %arg3[%c0_6, %c0_7, %c0_8], %17 {strides = array<i32>} : memref<1x4x256xf32, #tpu.memory_space<vmem>>, vector<1x4x256xf32>,
    return
  }
  func.func @transform_0(%arg0: i32, %arg1: i32) -> (i32, i32, i32) {
    %c0_i32 = arith.constant 0 : i32
    %c0_i32_0 = arith.constant 0 : i32
    return %arg0, %c0_i32, %arg1 : i32, i32, i32
  }
  func.func @transform_1(%arg0: i32, %arg1: i32) -> (i32, i32, i32) {
    %c0_i32 = arith.constant 0 : i32
    %c0_i32_0 = arith.constant 0 : i32
    return %arg0, %c0_i32, %arg1 : i32, i32, i32
  }
}

</mosaic_0001>

<bundles_post_ra>
// kernel: tpu_custom_call.1
= control target key start
LH: loop header
LB: loop body
LE: loop exit
PB: predicated region body
PF: predicated region fallthrough
CT: control target
= control target key end

     0   :  { %6 = vsyncpa [#allocation3], 0  ;;  %s719_s0 = inlined_call_operand.hbm [shape: f32[2,4,256], index: 0, kind: input, shape index: {}]   ;;  %s720_s1 = inlined_call_operand.hbm [shape: f32[2,4,256], index: 1, kind: output, shape index: {}]  }
   0x1   :  { %8 = vsyncpa [#allocation3 + $0x1], 0 }
   0x2   :  { %9 = vsyncpa [#allocation4], 0 }
   0x3   :  { %11 = vsyncpa [#allocation4 + $0x1], 0  ;;  %s539_s6 = smov 0   ;;  %s541_s7 = smov 0  }
   0x4   :  { %s543_s8 = smov 0   ;;  %s545_s9 = smov 0  }
   0x5   :  { %s547_s10 = smov 0   ;;  %s549_s11 = smov 0  }
   0x6 LB: > { %s325_s12 = sadd.s32 4294967295, %s525_s11   ;;  %s326_s13 = sadd.s32 4294967294, %s525_s11   ;;  %s525_s11 = sphi %s549_s11, %s17_s11   ;;  %s521_s10 = sphi %s547_s10, %s736_s10   ;;  %s517_s9 = sphi %s545_s9, %s735_s9   ;;  %s513_s8 = sphi %s543_s8, %s734_s8   ;;  %s509_s7 = sphi %s541_s7, %s733_s7   ;;  %s505_s6 = sphi %s539_s6, %s732_s6  }
   0x7   : > { %s29_s14 = sadd.s32 1, %s521_s10  ;;  %s38_s15 = sadd.s32 1, %s513_s8 }
   0x8   : > { %p31_p0 = scmp.ge.s32.totalorder %s29_s14, 2  ;;  %p45_p1 = scmp.ne.s32.totalorder %s513_s8, %s509_s7 }
   0x9   : > { %p46_p2 = scmp.eq.s32.totalorder %s525_s11, 0  ;;  %p51_p3 = scmp.ne.s32.totalorder %s509_s7, %s505_s6 }
   0xa   : > { %s738_s14 = smov (%p31_p0, %s29_s14), 0  ;;  %p52_p5 = scmp.eq.s32.totalorder %s325_s12, 0 }
   0xb   : > { %p580_p4 = por %p46_p2, %p45_p1  ;;  %s33_s17 = ssub.s32 %s521_s10, %s738_s14 }
   0xc   : > { %p77_p6 = scmp.eq.s32.totalorder %s325_s12, 1  ;;  %p36_p7 = scmp.eq.s32.totalorder %s33_s17, 0 }
   0xd   : > { %p586_p8 = por %p52_p5, %p51_p3  ;;  %p83_p10 = scmp.eq.s32.totalorder %s326_s13, 1 }
   0xe   : > { %p590_p9 = por %p77_p6, %p45_p1  ;;  %p354_p13 = scmp.lt.s32.totalorder %s525_s11, 2 }
   0xf   : > { %s595_s20 = scalar_select %p36_p7, %s513_s8, %s38_s15  }
  0x10   : > { %s724_s19 = scalar_select %p590_p9, 1, 0 }
  0x11   : > { %p597_p11 = por %p83_p10, %p51_p3  ;;  %s103_s22 = sand.u32 1, %s513_s8  }
  0x12   : > { %s329_s23 = sshll.u32 %s103_s22, 3  ;;  %s340_s24 = sshll.u32 %s521_s10, 7 }
  0x13   : > { %s725_s21 = scalar_select %p597_p11, 1, 0 }
  0x14   : > { %s608_s27 = scalar_lea.hbm %s719_s0, %s340_s24  ;;  %s107_s28 = scalar_lea.vmem [#allocation2], %s329_s23 }
  0x15   : > { %s117_s29 = sshll.u32 %s107_s28, 4  ;;  %p614_p0 = pnand %p354_p13, %p580_p4  ;;  %s610_s29 = int_to_ptr.vmem [resolvable:$true] %s117_s29 }
  0x16   : > { %s104_s2 = scalar_lea.sflag [#allocation3], %s103_s22  ;;  %s413_s3 = scalar_lea.hbm %s608_s27, 128 }
  0x17   : > { %p414_p3 = scmp.ne.s32.totalorder %s608_s27, %s413_s3  ;;  %p415_p5 = pneg %p614_p0 }
  0x18   : > { %s418_s12 = scalar_lea.hbm %s719_s0, 256  ;;  %p419_p4 = scmp.lt.u32.totalorder %s608_s27, %s719_s0 }
  0x19   : > { %p416_p6 = pnand %p415_p5, %p414_p3  ;;  %p420_p10 = scmp.lt.u32.totalorder %s418_s12, %s413_s3 }
  0x1a   : > { %p422_p12 = scmp.lt.u32.totalorder %s413_s3, %s608_s27 }
  0x1b   : > { %p417_p7 = pneg %p416_p6  ;;  %p421_p13 = por %p420_p10, %p419_p4 }
  0x1d   : > { %p423_p1 = por %p422_p12, %p421_p13 }
  0x1f   : > { %p424_p2 = pnand %p423_p1, %p417_p7 }
  0x21   : > { %427 = shalt.err (!%p424_p2)
}
  0x22   : > { %s428_s16 = scalar_lea.vmem %s610_s29, 128  ;;  %s527_s17 = smov [#allocation2]  }
  0x23   : > { %p429_p3 = scmp.ne.s32.totalorder %s610_s29, %s428_s16  ;;  %s433_s22 = sshll.u32 %s527_s17, 4  ;;  %s434_s22 = int_to_ptr.vmem [resolvable:$false] %s433_s22 }
  0x24   : > { %s435_s23 = scalar_lea.vmem %s434_s22, 256  ;;  %p436_p9 = scmp.lt.s32.totalorder %s610_s29, %s434_s22 }
  0x25   : > { %p431_p6 = pnand %p429_p3, %p415_p5  ;;  %p437_p4 = scmp.lt.s32.totalorder %s435_s23, %s428_s16 }
  0x27   : > { %p432_p11 = pneg %p431_p6  ;;  %p438_p10 = por %p437_p4, %p436_p9 }
  0x29   : > { %p439_p12 = pnand %p438_p10, %p432_p11 }
  0x2b   : > { %442 = shalt.err (!%p439_p12)
}
  0x2c   : > { %349 = dma.hbm_to_vmem [thread:$0]  (!%p614_p0), %s608_s27, 128, %s610_s29, %s104_s2  }
  0x2d   : > { %p727_p1 = scmp.lt.s32.totalorder %s525_s11, 3  ;;  %p728_p2 = scmp.ge.s32.totalorder %s525_s11, 1 }
  0x2f   : > { %p123_p5 = pnand %p728_p2, %p727_p1 }
  0x30   : > { %s650_s24 = sand.u32 (!%p123_p5), 1, %s509_s7  }
  0x31   : > { %126 = sbr.rel (%p123_p5) target bundleno = 144 (0x90), region = 24  ;;  %s333_s25 = sshll.u32 (!%p123_p5), %s650_s24, 3 }
  0x32   : > { %s129_s26 = scalar_lea.sflag (!%p123_p5), [#allocation3], %s650_s24  ;;  %s132_s28 = scalar_lea.vmem (!%p123_p5), [#allocation2], %s333_s25 }
  0x38   : > { %496 = dma.done.wait (%p586_p8), %s129_s26, 128  }
  0x39   : > { %498 = vsyncadd (%p586_p8), %s129_s26, 4294967168  ;;  %vm157_vm0 = vcmask 1043456   ;;  %v153_v0 = vld [vmem:[%s132_s28] sm:$0xff]  ;;  %s150_s18 = scalar_lea.vmem [#allocation5], %s333_s25  ;;  %s341_s29 = sshll.u32 %s517_s9, 7 }
  0x3a   : > { %v155_v1 = vcombine.high %v153_v0, %v153_v0  ;;  %v158_v2 = vsel %vm157_vm0, %v153_v0, 0.0  ;;  %s241_s27 = sshll.u32 %s150_s18, 4  ;;  %s672_s3 = scalar_lea.hbm %s720_s1, %s341_s29  ;;  %s667_s27 = int_to_ptr.vmem [resolvable:$true] %s241_s27 }
  0x3b   : > { %v159_v3 = vrot.slane %v158_v2, 4  ;;  %s225_s4 = scalar_lea.sflag [#allocation4], %s650_s24  ;;  %s443_s5 = scalar_lea.vmem %s667_s27, 128 }
  0x3c   : > { %v165_v4 = vsel %vm157_vm0, %v155_v1, 0.0  ;;  %p444_p8 = scmp.ne.s32.totalorder %s667_s27, %s443_s5  ;;  %p729_p9 = scmp.ne.s32.totalorder %s724_s19, 0 }
  0x3d   : > { %v160_v5 = vadd.f32 %v159_v3, %v158_v2  ;;  %v166_v6 = vrot.slane %v165_v4, 4  ;;  %s528_s9 = smov [#allocation5]  }
  0x3e   : > { %p445_p11 = pnand %p444_p8, %p729_p9  ;;  %s447_s12 = sshll.u32 %s528_s9, 4  ;;  %s448_s12 = int_to_ptr.vmem [resolvable:$false] %s447_s12 }
  0x3f   : > { %v161_v7 = vrot.slane %v160_v5, 2  ;;  %v167_v8 = vadd.f32 %v166_v6, %v165_v4  ;;  %s449_s13 = scalar_lea.vmem %s448_s12, 256  ;;  %p450_p7 = scmp.lt.s32.totalorder %s667_s27, %s448_s12 }
  0x40   : > { %p446_p0 = pneg %p445_p11  ;;  %p451_p13 = scmp.lt.s32.totalorder %s449_s13, %s443_s5 }
  0x41   : > { %v162_v9 = vadd.f32 %v161_v7, %v160_v5  ;;  %v168_v10 = vrot.slane %v167_v8, 2 }
  0x42   : > { %p452_p3 = por %p451_p13, %p450_p7 }
  0x43   : > { %v163_v11 = vrot.slane %v162_v9, 1  ;;  %v169_v12 = vadd.f32 %v168_v10, %v167_v8 }
  0x44   : > { %p453_p6 = pnand %p452_p3, %p446_p0 }
  0x45   : > { %v164_v13 = vadd.f32 %v163_v11, %v162_v9  ;;  %v170_v14 = vrot.slane %v169_v12, 1 }
  0x47   : > { %v171_v15 = vadd.f32 %v170_v14, %v169_v12  ;;  %v173_v16 = vmul.f32 0.25, %v164_v13 }
  0x49   : > { %v174_v17 = vmul.f32 0.25, %v171_v15 }
  0x4b   : > { %v177_v18 = vcombine.low %v173_v16, %v174_v17 }
  0x4d   : > { %v179_v19 = vsub.f32 %v153_v0, %v177_v18 }
  0x4f   : > { %v180_v20 = vmul.f32 %v179_v19, %v179_v19 }
  0x51   : > { %v182_v21 = vcombine.high %v180_v20, %v180_v20  ;;  %v184_v22 = vsel %vm157_vm0, %v180_v20, 0.0 }
  0x52   : > { %v185_v23 = vrot.slane %v184_v22, 4 }
  0x53   : > { %v191_v24 = vsel %vm157_vm0, %v182_v21, 0.0 }
  0x54   : > { %v186_v25 = vadd.f32 %v185_v23, %v184_v22  ;;  %v192_v26 = vrot.slane %v191_v24, 4 }
  0x56   : > { %v187_v27 = vrot.slane %v186_v25, 2  ;;  %v193_v28 = vadd.f32 %v192_v26, %v191_v24 }
  0x58   : > { %v188_v29 = vadd.f32 %v187_v27, %v186_v25  ;;  %v194_v30 = vrot.slane %v193_v28, 2 }
  0x5a   : > { %v189_v31 = vrot.slane %v188_v29, 1  ;;  %v195_v32 = vadd.f32 %v194_v30, %v193_v28 }
  0x5c   : > { %v190_v33 = vadd.f32 %v189_v31, %v188_v29  ;;  %v196_v34 = vrot.slane %v195_v32, 1 }
  0x5e   : > { %v197_v35 = vadd.f32 %v196_v34, %v195_v32  ;;  %v198_v36 = vmul.f32 0.33333334, %v190_v33 }
  0x60   : > { %v199_v37 = vmul.f32 0.33333334, %v197_v35  ;;  %405 = vrsqrt.f32 %v198_v36  ;;  %vm202_vm1 = vcmp.eq.f32.partialorder %v198_v36, inf  ;;  %v205_v39 = vand.u32 2147483648, %v198_v36 }
  0x61   : > { %vm204_vm2 = vcmp.eq.f32.partialorder %v198_v36, 0.0 }
  0x62   : > { %407 = vrsqrt.f32 %v199_v37  ;;  %vm209_vm3 = vcmp.eq.f32.partialorder %v199_v37, inf  ;;  %v212_v42 = vand.u32 2147483648, %v199_v37  ;;  %vm211_vm4 = vcmp.eq.f32.partialorder %v199_v37, 0.0 }
  0x6a   : > { %v406_v38 = vpop.eup %405 }
  0x6b   : > { %v201_v40 = vmul.f32 %v406_v38, %v198_v36 }
  0x6c   : > { %v408_v41 = vpop.eup %407 }
  0x6d   : > { %v203_v43 = vsel %vm202_vm1, %v198_v36, %v201_v40  ;;  %v208_v44 = vmul.f32 %v408_v41, %v199_v37 }
  0x6e   : > { %v206_v45 = vsel %vm204_vm2, %v205_v39, %v203_v43 }
  0x6f   : > { %v210_v46 = vsel %vm209_vm3, %v199_v37, %v208_v44  ;;  %v214_v47 = vadd.f32 1e-06, %v206_v45 }
  0x70   : > { %v213_v48 = vsel %vm211_vm4, %v212_v42, %v210_v46 }
  0x71   : > { %v215_v49 = vadd.f32 1e-06, %v213_v48  ;;  %409 = vrcp.f32 %v214_v47 }
  0x73   : > { %411 = vrcp.f32 %v215_v49 }
  0x7b   : > { %v410_v50 = vpop.eup %409 }
  0x7d   : > { %v412_v51 = vpop.eup %411 }
  0x7e   : > { %v220_v52 = vcombine.low %v410_v50, %v412_v51 }
  0x80   : > { %v222_v53 = vmul.f32 %v220_v52, %v179_v19 }
  0x82   : > { %223 = vst [vmem:[%s150_s18] sm:$0xff] %v222_v53 }
  0x83   : > { %456 = shalt.err (!%p453_p6)
}
  0x84   : > { %s457_s15 = scalar_lea.hbm %s672_s3, 128  ;;  %s461_s22 = scalar_lea.hbm %s720_s1, 256 }
  0x85   : > { %p458_p4 = scmp.ne.s32.totalorder %s672_s3, %s457_s15  ;;  %p462_p1 = scmp.lt.u32.totalorder %s672_s3, %s720_s1 }
  0x86   : > { %p463_p2 = scmp.lt.u32.totalorder %s461_s22, %s457_s15  ;;  %p465_p8 = scmp.lt.u32.totalorder %s457_s15, %s672_s3 }
  0x87   : > { %p459_p10 = pnand %p458_p4, %p729_p9 }
  0x88   : > { %p464_p5 = por %p463_p2, %p462_p1 }
  0x89   : > { %p460_p12 = pneg %p459_p10 }
  0x8a   : > { %p466_p11 = por %p465_p8, %p464_p5 }
  0x8c   : > { %p467_p0 = pnand %p466_p11, %p460_p12 }
  0x8e   : > { %470 = shalt.err (!%p467_p0)
}
  0x8f   : > { %344 = dma.vmem_to_hbm [thread:$0]  (%p729_p9), %s667_s27, 128, %s672_s3, %s225_s4  }
  0x90 PF: > { %s253_s25 = sand.u32 1, %s505_s6   ;;  %p730_p7 = scmp.ne.s32.totalorder %s725_s21, 0 }
  0x91   : > { %p731_p13 = scmp.ge.s32.totalorder %s525_s11, 2  ;;  %s254_s26 = scalar_lea.sflag [#allocation4], %s253_s25 }
  0x93   : > { %p351_p3 = pnand %p731_p13, %p730_p7 }
  0x95   : > { %500 = dma.done.wait (!%p351_p3), %s254_s26, 128  }
  0x96   : > { %502 = vsyncadd (!%p351_p3), %s254_s26, 4294967168  ;;  %s17_s11 = sadd.s32 1, %s525_s11   ;;  %s732_s6 = smov %s509_s7 }
  0x97   : > { %p14_p6 = scmp.ge.s32.totalorder %s17_s11, 4   ;;  %s733_s7 = smov %s513_s8 }
  0x98   : > { %s734_s8 = smov %s595_s20  ;;  %s735_s9 = smov %s521_s10 }
  0x99   : > { %s736_s10 = smov %s738_s14  ;;  %16 = sbr.rel (!%p14_p6) target bundleno = 6 (0x6), region = 69 }
  0xa0   :  { %259 = vsyncpa [#allocation3], 1 }
  0xa1   :  { %261 = vsyncpa [#allocation3 + $0x1], 1 }
  0xa2   :  { %262 = vsyncpa [#allocation4], 1 }
  0xa3   :  { %264 = vsyncpa [#allocation4 + $0x1], 1 }

</bundles_post_ra>
